<compile_context>
chip_gen: v5e
topology: v5e:2x2
jax: 0.10.0
libtpu: 0.0.40
codegen_flags: <defaults>
</compile_context>

<pallas_src>
import jax
import jax.numpy as jnp
from jax.experimental import pallas as pl
from jax.experimental.pallas import tpu as pltpu

SINIT_VALUE = -200.0

_MAX_BLOCK_BYTES = 4 << 20     # ~4 MiB blocks: near HBM roofline, fits every TPU gen
_VMEM_LIMIT_BYTES = 32 << 20   # > v5e scoped default (16 MiB), << v7x physical (64 MiB)


def _fcpts_kernel(thr_ref, x_ref, o_ref):
    """out = x where |x| > threshold else 0 (elementwise)."""
    thr = thr_ref[0]                                   # scalar threshold from SMEM (f32)
    x = x_ref[...]
    keep = jnp.abs(x).astype(jnp.float32) > thr        # compare in f32, matches torch promotion
    o_ref[...] = jnp.where(keep, x, jnp.zeros_like(x))


def _min_sublane(dtype):
    # Native (sublane, lane) tiling: f32 -> (8,128), bf16 -> (16,128), 8-bit -> (32,128).
    return {4: 8, 2: 16, 1: 32}.get(jnp.dtype(dtype).itemsize, 8)


def _pick_width(total):
    """Widest lane-dense slab width (multiple of 128) dividing the flat size."""
    for width in (1024, 512, 256, 128):
        if total % width == 0:
            return width, True
    # Ragged total: will take the (tiny) padded path.
    return (1024 if total >= 1024 else 128), False


def fcpts_fake_sparse_forward(x, scores, fake_sparse_enabled=True):
    """JAX wrapper mirroring FCPTSFakeSparse.forward."""
    if not fake_sparse_enabled:
        return x

    orig_shape = x.shape
    dtype = x.dtype
    total = x.size
    itemsize = jnp.dtype(dtype).itemsize
    min_sub = _min_sublane(dtype)

    # Single scalar threshold, computed once outside the kernel.
    thr = jax.nn.sigmoid(scores.astype(jnp.float32)).reshape(-1)[:1]   # shape (1,), f32

    # Lane-dense 2-D slab layout.
    width, exact = _pick_width(total)
    if exact:
        rows = total // width
        xf = x.reshape(rows, width)           # pure reshape, zero extra HBM traffic
        needs_slice = False
    else:
        rows = pl.cdiv(total, width)
        pad = rows * width - total            # < width elements of pad
        xf = jnp.pad(x.reshape(-1), (0, pad)).reshape(rows, width)
        needs_slice = True

    # Block sizing: big VMEM tiles; partial last block is masked by Pallas.
    max_rows = max(min_sub,
                   (_MAX_BLOCK_BYTES // (width * itemsize)) // min_sub * min_sub)
    if rows <= max_rows:
        block_rows = rows                     # block equals full dim -> always legal
    else:
        block_rows = max_rows                 # multiple of min_sub (>= 8)

    grid = (pl.cdiv(rows, block_rows),)

    out = pl.pallas_call(
        _fcpts_kernel,
        out_shape=jax.ShapeDtypeStruct((rows, width), dtype),
        grid_spec=pl.GridSpec(
            grid=grid,
            in_specs=[
                pl.BlockSpec(memory_space=pltpu.MemorySpace.SMEM),       # threshold scalar
                pl.BlockSpec((block_rows, width), lambda i: (i, 0)),     # x tile
            ],
            out_specs=pl.BlockSpec((block_rows, width), lambda i: (i, 0)),
        ),
        compiler_params=pltpu.CompilerParams(
            dimension_semantics=("parallel",),    # independent tiles -> megacore sharding
            vmem_limit_bytes=_VMEM_LIMIT_BYTES,
        ),
    )(thr, xf)

    if needs_slice:
        out = out.reshape(-1)[:total]
    return out.reshape(orig_shape)


if __name__ == "__main__":
    key = jax.random.PRNGKey(0)

    # Deterministic parameter init per module __init__: scores = ones(1,1) * sInit_value
    scores = jnp.ones((1, 1), dtype=jnp.float32) * SINIT_VALUE

    def reference(x, scores):
        thr = jax.nn.sigmoid(scores.astype(jnp.float32))[0, 0]
        mask = (jnp.abs(x.astype(jnp.float32)) > thr).astype(x.dtype)
        return x * mask

    k1, k2, k3, k4 = jax.random.split(key, 4)
    cases = [
        jax.random.normal(k1, (2, 4, 16, 16), dtype=jnp.float32),   # zero-copy, rows < 8
        jax.random.normal(k2, (1, 8, 32, 32), dtype=jnp.float32),   # zero-copy, rows = 8
        jax.random.normal(k3, (3, 5, 7, 11), dtype=jnp.float32),    # ragged total -> pad path
        jax.random.normal(k4, (2, 4, 16, 16), dtype=jnp.float32).astype(jnp.bfloat16),
    ]

    for x in cases:
        out = jax.block_until_ready(fcpts_fake_sparse_forward(x, scores))
        ref = reference(x, scores)
        assert out.shape == x.shape and out.dtype == x.dtype
        assert jnp.allclose(out.astype(jnp.float32), ref.astype(jnp.float32),
                            atol=1e-6, rtol=1e-6)

    # Disabled fake-sparse passes input through untouched.
    x0 = cases[0]
    assert jnp.array_equal(
        fcpts_fake_sparse_forward(x0, scores, fake_sparse_enabled=False), x0)

    print("KERNEL_OK")
</pallas_src>

<mosaic_0001>
module attributes {stable_mosaic.version = 11 : i64} {
  func.func @_fcpts_kernel(%arg0: i32, %arg1: memref<1xf32, #tpu.memory_space<smem>>, %arg2: memref<2x1024xf32, #tpu.memory_space<vmem>>, %arg3: memref<2x1024xf32, #tpu.memory_space<vmem>>) attributes {dimension_semantics = [#tpu.dimension_semantics<parallel>], iteration_bounds = array<i64: 1>, scalar_prefetch = 0 : i64, scratch_operands = 0 : i64, tpu.core_type = #tpu.core_type<tc>, window_params = [{transform_indices = @transform_0, window_bounds = array<i64: 1>}, {transform_indices = @transform_1, window_bounds = array<i64: 2, 1024>}, {transform_indices = @transform_2, window_bounds = array<i64: 2, 1024>}]} {
    %c0 = arith.constant 0 : index
    %0 = memref.load %arg1[%c0] : memref<1xf32, #tpu.memory_space<smem>>
    %c0_0 = arith.constant 0 : index
    %c0_1 = arith.constant 0 : index
    %1 = vector.load %arg2[%c0_0, %c0_1] : memref<2x1024xf32, #tpu.memory_space<vmem>>, vector<2x1024xf32>
    %2 = math.absf %1 : vector<2x1024xf32>
    %3 = vector.broadcast %0 : f32 to vector<2x1024xf32>
    %4 = arith.cmpf ogt, %2, %3 : vector<2x1024xf32>
    %cst = arith.constant 0.000000e+00 : f32
    %5 = vector.broadcast %cst : f32 to vector<2x1024xf32>
    %6 = arith.select %4, %1, %5 : vector<2x1024xi1>, vector<2x1024xf32>
    %c0_2 = arith.constant 0 : index
    %c0_3 = arith.constant 0 : index
    %7 = vector.load %arg3[%c0_2, %c0_3] : memref<2x1024xf32, #tpu.memory_space<vmem>>, vector<2x1024xf32>
    tpu.vector_store %arg3[%c0_2, %c0_3], %6 {strides = array<i32>} : memref<2x1024xf32, #tpu.memory_space<vmem>>, vector<2x1024xf32>,
    return
  }
  func.func @transform_0(%arg0: i32) -> i32 {
    %c0_i32 = arith.constant 0 : i32
    %c0_i32_0 = arith.constant 0 : i32
    return %c0_i32 : i32
  }
  func.func @transform_1(%arg0: i32) -> (i32, i32) {
    %c0_i32 = arith.constant 0 : i32
    %c0_i32_0 = arith.constant 0 : i32
    return %arg0, %c0_i32 : i32, i32
  }
  func.func @transform_2(%arg0: i32) -> (i32, i32) {
    %c0_i32 = arith.constant 0 : i32
    %c0_i32_0 = arith.constant 0 : i32
    return %arg0, %c0_i32 : i32, i32
  }
}

</mosaic_0001>

<bundles_post_ra>
// kernel: tpu_custom_call.1
= control target key start
LH: loop header
LB: loop body
LE: loop exit
PB: predicated region body
PF: predicated region fallthrough
CT: control target
= control target key end

     0   :  { %8 = vsyncpa [#allocation4], 0  ;;  %s136_s0 = inlined_call_operand.<no memory space> [shape: f32[1], index: 0, kind: input, shape index: {}]   ;;  %s137_s1 = inlined_call_operand.hbm [shape: f32[2,1024], index: 1, kind: input, shape index: {}]   ;;  %s138_s2 = inlined_call_operand.hbm [shape: f32[2,1024], index: 2, kind: output, shape index: {}]  }
   0x1   :  { %9 = vsyncpa [#allocation5], 0  ;;  %s17_s11 = sshll.u32 %s137_s1, 4  ;;  %s110_s12 = smov [#allocation3]   ;;  %s18_s11 = int_to_ptr.hbm [resolvable:$true] %s17_s11 }
   0x2   :  { %s19_s13 = sshll.u32 %s110_s12, 4  ;;  %s20_s13 = int_to_ptr.vmem [resolvable:$true] %s19_s13 }
   0x3   :  { %22 = dma.hbm_to_vmem [thread:$0]  %s18_s11, 256, %s20_s13, [#allocation4]  }
   0x4   :  { %106 = dma.done.wait [#allocation4], 256  }
   0x5   :  { %107 = vsyncadd [#allocation4], 4294967040  ;;  %v28_v0 = vld [vmem:[#allocation3] sm:$0xff]  ;;  %v32_v1 = vstv %s136_s0  ;;  %v29_v2 = vld [vmem:[#allocation3 + $0x8] sm:$0xff]  ;;  %s111_s16 = smov [#allocation6]   ;;  %s46_s1 = sshll.u32 %s138_s2, 4  ;;  %s47_s1 = int_to_ptr.hbm [resolvable:$true] %s46_s1 }
   0x6   :  { %v30_v3 = vand.u32 2147483647, %v28_v0  ;;  %v31_v4 = vand.u32 2147483647, %v29_v2  ;;  %s44_s17 = sshll.u32 %s111_s16, 4  ;;  %s45_s17 = int_to_ptr.vmem [resolvable:$true] %s44_s17 }
   0x8   :  { %vm33_vm0 = vcmp.gt.f32.partialorder %v30_v3, %v32_v1  ;;  %vm34_vm1 = vcmp.gt.f32.partialorder %v31_v4, %v32_v1 }
   0x9   :  { %v35_v5 = vsel %vm33_vm0, %v28_v0, 0.0  ;;  %v36_v6 = vsel %vm34_vm1, %v29_v2, 0.0 }
   0xa   :  { %37 = vst [vmem:[#allocation6] sm:$0xff] %v35_v5 }
   0xb   :  { %38 = vst [vmem:[#allocation6 + $0x8] sm:$0xff] %v36_v6 }
   0xc   :  { %49 = dma.vmem_to_hbm [thread:$0]  %s45_s17, 256, %s47_s1, [#allocation5]  }
   0xd   :  { %108 = dma.done.wait [#allocation5], 256  }
   0xe   :  { %109 = vsyncadd [#allocation5], 4294967040 }
   0xf   :  { %54 = vsyncpa [#allocation4], 1 }
  0x10   :  { %55 = vsyncpa [#allocation5], 1 }

</bundles_post_ra>
